<compile_context>
chip_gen: v5e
topology: v5e:2x2
jax: 0.10.0
libtpu: 0.0.40
codegen_flags: <defaults>
</compile_context>

<pallas_src>
import jax
import jax.numpy as jnp
from jax.experimental import pallas as pl
from jax.experimental.pallas import tpu as pltpu

_LANE = 128          # TPU lane width
_TM_MAX = 512        # max rows (B*C) per tile
_TK_MAX = 2048       # max spatial elements (H*W) per tile
# Max input tile: 512 * 2048 * 4 B = 4 MiB; x2 (double buffering) = 8 MiB,
# which fits every generation's VMEM, including v7x's 64 MiB per TensorCore.


def _round_up(n: int, m: int) -> int:
    return ((n + m - 1) // m) * m


def _pick_tile(padded_dim: int, unit: int, max_tile: int) -> int:
    """Largest multiple of `unit` that divides `padded_dim` and is <= max_tile."""
    n_units = padded_dim // unit
    max_units = max(1, min(n_units, max_tile // unit))
    for d in range(max_units, 0, -1):
        if n_units % d == 0:
            return d * unit
    return unit


def _make_sum_pool_kernel(tk: int):
    n_chunks = tk // _LANE

    def kernel(x_ref, o_ref, acc_ref):
        # x_ref:   (TM, TK)  input tile (rows = flattened B*C, cols = H*W slice)
        # o_ref:   (TM, 1)   per-row sums (written once, at the last k step)
        # acc_ref: (TM, 128) float32 running accumulator (VMEM scratch)
        k = pl.program_id(1)

        @pl.when(k == 0)
        def _init():
            acc_ref[...] = jnp.zeros_like(acc_ref)

        # Hot path: fold the TK-wide tile into 128-lane chunks with VPU adds.
        x = x_ref[...].astype(jnp.float32)
        acc = acc_ref[...]
        for c in range(n_chunks):              # static unroll (tk is compile-time)
            acc = acc + x[:, c * _LANE:(c + 1) * _LANE]
        acc_ref[...] = acc

        @pl.when(k == pl.num_programs(1) - 1)
        def _finalize():
            # One cross-lane (XLU) reduce per row tile, then cast + store.
            o_ref[...] = jnp.sum(acc_ref[...], axis=-1,
                                 keepdims=True).astype(o_ref.dtype)

    return kernel


def global_sum_pooling_2d(x: jax.Array, *, min_pallas_bytes: int = 1 << 20):
    """Pallas equivalent of GlobalSumPooling2D.forward: sum over dims (2, 3)."""
    assert x.ndim == 4, "expected 4D input (B, C, H, W)"
    b, c, h, w = x.shape

    # Tiny inputs: pallas_call fixed overhead dominates; let XLA fuse it.
    if x.size * x.dtype.itemsize < min_pallas_bytes:
        return jnp.sum(x, axis=(2, 3))

    bc, hw = b * c, h * w
    x2 = x.reshape(bc, hw)                     # free view for contiguous NCHW

    # Sublane multiple depends on dtype packing (f32: 8, bf16: 16, int8/fp8: 32).
    sub = max(8, 32 // x.dtype.itemsize)
    bc_p = _round_up(bc, sub)
    hw_p = _round_up(hw, _LANE)
    tm = _pick_tile(bc_p, sub, max(_TM_MAX, sub))
    tk = _pick_tile(hw_p, _LANE, max(_TK_MAX, _LANE))
    if (bc_p, hw_p) != (bc, hw):
        # Zero padding is sum-neutral; padded rows are sliced off below.
        x2 = jnp.pad(x2, ((0, bc_p - bc), (0, hw_p - hw)))

    grid = (bc_p // tm, hw_p // tk)            # rows parallel, reduction last

    out = pl.pallas_call(
        _make_sum_pool_kernel(tk),
        out_shape=jax.ShapeDtypeStruct((bc_p, 1), x.dtype),
        grid_spec=pltpu.PrefetchScalarGridSpec(
            num_scalar_prefetch=0,
            grid=grid,
            in_specs=[pl.BlockSpec((tm, tk), lambda i, k: (i, k))],
            out_specs=pl.BlockSpec((tm, 1), lambda i, k: (i, 0)),
            scratch_shapes=[pltpu.VMEM((tm, _LANE), jnp.float32)],
        ),
        compiler_params=pltpu.CompilerParams(
            dimension_semantics=("parallel", "arbitrary"),
            vmem_limit_bytes=48 * 1024 * 1024,
        ),
    )(x2)

    return out[:bc, 0].reshape(b, c)


if __name__ == "__main__":
    key = jax.random.PRNGKey(0)
    k0, k1, k2 = jax.random.split(key, 3)

    # 1) Small demo shape from the module contract (forced through the kernel).
    x_small = jax.random.normal(k0, (2, 4, 16, 16), dtype=jnp.float32)
    out_small = jax.block_until_ready(
        global_sum_pooling_2d(x_small, min_pallas_bytes=0))
    ref_small = jnp.sum(x_small, axis=(2, 3))
    assert out_small.shape == ref_small.shape == (2, 4)
    assert jnp.allclose(out_small, ref_small, atol=1e-4, rtol=1e-5)

    # 2) Larger f32 input: exercises the tiled grid, multi-step accumulation,
    #    and takes the Pallas path under the default size threshold.
    x_big = jax.random.normal(k1, (4, 32, 64, 64), dtype=jnp.float32)
    out_big = jax.block_until_ready(global_sum_pooling_2d(x_big))
    ref_big = jnp.sum(x_big, axis=(2, 3))
    assert out_big.shape == ref_big.shape == (4, 32)
    assert jnp.allclose(out_big, ref_big, atol=1e-2, rtol=1e-4)

    # 3) bf16 input: checks the f32-accumulate / cast-at-final-store path.
    x_bf16 = jax.random.normal(k2, (2, 8, 32, 32), dtype=jnp.bfloat16)
    out_bf16 = jax.block_until_ready(
        global_sum_pooling_2d(x_bf16, min_pallas_bytes=0))
    ref_bf16 = jnp.sum(x_bf16.astype(jnp.float32), axis=(2, 3))
    assert out_bf16.shape == (2, 8)
    assert jnp.allclose(out_bf16.astype(jnp.float32), ref_bf16,
                        atol=2e-1, rtol=2e-2)

    print("KERNEL_OK")
</pallas_src>

<mosaic_0001>
module attributes {stable_mosaic.version = 11 : i64} {
  func.func @kernel(%arg0: i32, %arg1: i32, %arg2: memref<8x256xf32, #tpu.memory_space<vmem>>, %arg3: memref<8x1xf32, #tpu.memory_space<vmem>>, %arg4: memref<8x128xf32, #tpu.memory_space<vmem>>) attributes {dimension_semantics = [#tpu.dimension_semantics<parallel>, #tpu.dimension_semantics<arbitrary>], iteration_bounds = array<i64: 1, 1>, scalar_prefetch = 0 : i64, scratch_operands = 1 : i64, tpu.core_type = #tpu.core_type<tc>, window_params = [{transform_indices = @transform_0, window_bounds = array<i64: 8, 256>}, {transform_indices = @transform_1, window_bounds = array<i64: 8, 1>}]} {
    %c0_i32 = arith.constant 0 : i32
    %0 = arith.cmpi eq, %arg1, %c0_i32 : i32
    %1 = arith.extui %0 : i1 to i32
    %c0_i32_0 = arith.constant 0 : i32
    %2 = arith.cmpi ne, %1, %c0_i32_0 : i32
    scf.if %2 {
      %cst = arith.constant 0.000000e+00 : f32
      %13 = vector.broadcast %cst : f32 to vector<8x128xf32>
      %c0_8 = arith.constant 0 : index
      %c0_9 = arith.constant 0 : index
      %14 = vector.load %arg4[%c0_8, %c0_9] : memref<8x128xf32, #tpu.memory_space<vmem>>, vector<8x128xf32>
      tpu.vector_store %arg4[%c0_8, %c0_9], %13 {strides = array<i32>} : memref<8x128xf32, #tpu.memory_space<vmem>>, vector<8x128xf32>,
    } else {
    }
    %c0 = arith.constant 0 : index
    %c0_1 = arith.constant 0 : index
    %3 = vector.load %arg2[%c0, %c0_1] : memref<8x256xf32, #tpu.memory_space<vmem>>, vector<8x256xf32>
    %c0_2 = arith.constant 0 : index
    %c0_3 = arith.constant 0 : index
    %4 = vector.load %arg4[%c0_2, %c0_3] : memref<8x128xf32, #tpu.memory_space<vmem>>, vector<8x128xf32>
    %5 = vector.extract_strided_slice %3 {offsets = [0, 0], sizes = [8, 128], strides = [1, 1]} : vector<8x256xf32> to vector<8x128xf32>
    %6 = arith.addf %4, %5 : vector<8x128xf32>
    %7 = vector.extract_strided_slice %3 {offsets = [0, 128], sizes = [8, 128], strides = [1, 1]} : vector<8x256xf32> to vector<8x128xf32>
    %8 = arith.addf %6, %7 : vector<8x128xf32>
    %c0_4 = arith.constant 0 : index
    %c0_5 = arith.constant 0 : index
    %9 = vector.load %arg4[%c0_4, %c0_5] : memref<8x128xf32, #tpu.memory_space<vmem>>, vector<8x128xf32>
    tpu.vector_store %arg4[%c0_4, %c0_5], %8 {strides = array<i32>} : memref<8x128xf32, #tpu.memory_space<vmem>>, vector<8x128xf32>,
    %c0_i32_6 = arith.constant 0 : i32
    %10 = arith.cmpi eq, %arg1, %c0_i32_6 : i32
    %11 = arith.extui %10 : i1 to i32
    %c0_i32_7 = arith.constant 0 : i32
    %12 = arith.cmpi ne, %11, %c0_i32_7 : i32
    scf.if %12 {
      %c0_8 = arith.constant 0 : index
      %c0_9 = arith.constant 0 : index
      %13 = vector.load %arg4[%c0_8, %c0_9] : memref<8x128xf32, #tpu.memory_space<vmem>>, vector<8x128xf32>
      %cst = arith.constant dense<0.000000e+00> : vector<8xf32>
      %14 = vector.multi_reduction <add>, %13, %cst [1] : vector<8x128xf32> to vector<8xf32>
      %15 = vector.shape_cast %14 : vector<8xf32> to vector<8x1xf32>
      %c0_10 = arith.constant 0 : index
      %c0_11 = arith.constant 0 : index
      %16 = vector.load %arg3[%c0_10, %c0_11] : memref<8x1xf32, #tpu.memory_space<vmem>>, vector<8x1xf32>
      tpu.vector_store %arg3[%c0_10, %c0_11], %15 {strides = array<i32>} : memref<8x1xf32, #tpu.memory_space<vmem>>, vector<8x1xf32>,
    } else {
    }
    return
  }
  func.func @transform_0(%arg0: i32, %arg1: i32) -> (i32, i32) {
    %c0_i32 = arith.constant 0 : i32
    return %arg0, %arg1 : i32, i32
  }
  func.func @transform_1(%arg0: i32, %arg1: i32) -> (i32, i32) {
    %c0_i32 = arith.constant 0 : i32
    %c0_i32_0 = arith.constant 0 : i32
    return %arg0, %c0_i32 : i32, i32
  }
}

</mosaic_0001>

<bundles_post_ra>
// kernel: tpu_custom_call.1
= control target key start
LH: loop header
LB: loop body
LE: loop exit
PB: predicated region body
PF: predicated region fallthrough
CT: control target
= control target key end

     0   :  { %6 = vsyncpa [#allocation4], 0  ;;  %s73_s9 = smov [#allocation3]   ;;  %s90_s0 = inlined_call_operand.hbm [shape: f32[8,256], index: 0, kind: input, shape index: {}]   ;;  %s91_s1 = inlined_call_operand.vmem [shape: f32[8,1], index: 1, kind: output, shape index: {}]  }
   0x1   :  { %s12_s8 = sshll.u32 %s90_s0, 4  ;;  %s14_s10 = sshll.u32 %s73_s9, 4  ;;  %s13_s8 = int_to_ptr.hbm [resolvable:$true] %s12_s8  ;;  %s15_s10 = int_to_ptr.vmem [resolvable:$true] %s14_s10 }
   0x2   :  { %17 = dma.hbm_to_vmem [thread:$0]  %s13_s8, 256, %s15_s10, [#allocation4]  }
   0x3   :  { %71 = dma.done.wait [#allocation4], 256  }
   0x4   :  { %72 = vsyncadd [#allocation4], 4294967040  ;;  %v27_v0 = vld [vmem:[#allocation3] sm:$0xff]  ;;  %v28_v1 = vld [vmem:[#allocation3 + $0x8] sm:$0xff]  ;;  %vm39_vm0 = vcmask 7168  }
   0x5   :  { %v31_v2 = vadd.f32 %v28_v1, %v27_v0 }
   0x7   :  { %37 = vadd.xlane.f32.xlu0 %v31_v2 }
  0x7a   :  { %v38_v3 = vpop.xlane.xlu0 %37 }
  0x7b   :  { %40 = vst.msk [vmem:[%s91_s1] sm:$0xff] %vm39_vm0, %v38_v3 }
  0x7c   :  { %45 = vsyncpa [#allocation4], 1 }

</bundles_post_ra>
